<compile_context>
chip_gen: v5e
topology: v5e:2x2
jax: 0.10.0
libtpu: 0.0.40
codegen_flags: <defaults>
</compile_context>

<pallas_src>
import jax
import jax.numpy as jnp
import numpy as np
from jax import lax
from jax.experimental import pallas as pl
from jax.experimental.pallas import tpu as pltpu


def make_convbank_kernel(Bblk, T, H, kmax, maxpad, cdt):
    """Kernel for one block of Bblk batch elements (M = Bblk*T rows)."""
    M = Bblk * T

    def kernel(x_ref, w_in_ref, b_in_ref, w_bank_ref, b_bank_ref,
               w_out_ref, b_out_ref, o_ref):
        # in_linear + ReLU (cdt operands on the MXU, f32 accumulation).
        x = x_ref[...].astype(cdt)                                   # (M, Din)
        h = jnp.dot(x, w_in_ref[...], preferred_element_type=jnp.float32)
        h = jnp.maximum(h + b_in_ref[...], 0.0)                      # (M, H) f32
        # TODO(synk): train-mode F.dropout is stochastic; treated as identity
        # (eval / p=0).

        # Build the im2col slab in registers (no VMEM scratch): column block j
        # holds the hidden shifted by s = j - maxpad along T, zero outside each
        # length-T batch segment.  Shifts = static slice + zero fill; a per-row
        # mask kills rows that would leak across batch-element boundaries
        # (only needed when Bblk > 1).
        if Bblk > 1 and kmax > 1:
            t_idx = lax.broadcasted_iota(
                jnp.int32, (Bblk, T, H), 1).reshape(M, H)
        parts = []
        for j in range(kmax):
            s = j - maxpad
            if s == 0:
                sh = h
            elif s > 0:
                sh = jnp.concatenate(
                    [h[s:, :], jnp.zeros((s, H), jnp.float32)], axis=0)
            else:
                sh = jnp.concatenate(
                    [jnp.zeros((-s, H), jnp.float32), h[:M + s, :]], axis=0)
            if Bblk > 1 and s != 0:
                valid = jnp.logical_and(t_idx + s >= 0, t_idx + s < T)
                sh = jnp.where(valid, sh, 0.0)
            parts.append(sh.astype(cdt))
        slab = jnp.concatenate(parts, axis=-1)                       # (M, kmax*H)

        # Whole conv bank as a single matmul + packed bias + ReLU.
        conv = jnp.dot(slab, w_bank_ref[...],
                       preferred_element_type=jnp.float32)           # (M, NC)
        cat = jnp.maximum(conv + b_bank_ref[...], 0.0)

        # out_linear; output block is (M, O) with no lane padding written.
        y = jnp.dot(cat.astype(cdt), w_out_ref[...],
                    preferred_element_type=jnp.float32) + b_out_ref[...]
        o_ref[...] = y.astype(o_ref.dtype)                           # (M, O)

    return kernel


def pack_convbank_params(raw, kernels, compute_dtype=jnp.bfloat16):
    """Pack PyTorch-layout weights into the fused kernel layout."""
    kernels = tuple(kernels)
    assert len(kernels) > 0 and all(k % 2 == 1 for k in kernels), (
        "torch.cat in the reference module requires odd kernel sizes")
    H, Din = raw["w_in"].shape
    C = raw["w_convs"][0].shape[0]
    O = raw["w_out"].shape[0]
    nk = len(kernels)
    kmax = max(kernels)
    maxpad = kmax // 2
    NC = nk * C
    cdt = compute_dtype

    w_in_t = jnp.asarray(raw["w_in"]).T.astype(cdt)                  # (Din, H)
    b_in = jnp.asarray(raw["b_in"]).reshape(1, H).astype(jnp.float32)

    # One packed conv-bank weight (kmax*H, nk*C) + one packed bias (1, nk*C).
    # Rows that a shorter kernel lacks are zero (exact: 0 * finite hidden).
    w_bank = np.zeros((kmax * H, NC), np.float32)
    b_bank = np.zeros((1, NC), np.float32)
    for i, k in enumerate(kernels):
        wk = np.asarray(raw["w_convs"][i])                           # (C, H, k)
        shift = maxpad - k // 2
        for dk in range(k):
            j = shift + dk
            w_bank[j * H:(j + 1) * H, i * C:(i + 1) * C] = wk[:, :, dk].T
        b_bank[0, i * C:(i + 1) * C] = np.asarray(raw["b_convs"][i])

    w_out_t = jnp.asarray(np.asarray(raw["w_out"]).T).astype(cdt)    # (NC, O)
    b_out = jnp.asarray(raw["b_out"]).reshape(1, O).astype(jnp.float32)

    return dict(
        w_in_t=w_in_t, b_in=b_in,
        w_bank=jnp.asarray(w_bank).astype(cdt), b_bank=jnp.asarray(b_bank),
        w_out_t=w_out_t, b_out=b_out,
        dims=dict(Din=Din, H=H, C=C, O=O, NC=NC, kmax=kmax,
                  maxpad=maxpad, nk=nk),
        compute_dtype=cdt,
    )


def _num_tensorcores():
    """Best-effort TensorCore count (1 on v5e/v6e, 2 on v7x)."""
    try:
        info = pltpu.get_tpu_info()
    except Exception:
        return 1
    for attr in ("num_cores", "core_count", "num_tensorcores",
                 "tensor_core_count", "cores_per_chip"):
        v = getattr(info, attr, None)
        if isinstance(v, int) and v > 0:
            return v
    return 1


def _pick_bblk(B, T, n_cores, m_target=1024):
    # One fat block per core: grow M = bblk*T toward m_target rows, then only
    # force >=n_cores grid blocks when the chip actually has >1 TensorCore.
    bblk = max(1, min(B, max(1, m_target // max(T, 1))))
    while B % bblk:
        bblk -= 1
    while bblk > 1 and (B // bblk) < n_cores:
        bblk -= 1
        while B % bblk:
            bblk -= 1
    return bblk


def convbank_forward(features, packed, bblk=None, m_target=1024):
    """features: (B, T, Din) float32.  packed: from pack_convbank_params."""
    d = packed["dims"]
    Din, H, O, NC = d["Din"], d["H"], d["O"], d["NC"]
    kmax, maxpad = d["kmax"], d["maxpad"]
    cdt = packed["compute_dtype"]

    B, T, Din_f = features.shape
    assert Din_f == Din
    if bblk is None:
        bblk = _pick_bblk(B, T, _num_tensorcores(), m_target)
    # Block second-minor dims must be 8-aligned unless the block covers the
    # whole array; fall back to a single block if T would break that.
    if (B // bblk) > 1 and (bblk * T) % 8 != 0:
        bblk = B
    assert B % bblk == 0
    nb = B // bblk
    Mrows = bblk * T

    # Pass f32 features directly (cast to cdt inside the kernel) -- avoids an
    # extra HBM pass for a wrapper-side dtype cast.
    x2 = features.reshape(B * T, Din)

    def full_spec(a):
        return pl.BlockSpec(a.shape, lambda i, _nd=a.ndim: (0,) * _nd)

    kernel = make_convbank_kernel(bblk, T, H, kmax, maxpad, cdt)

    w_item = jnp.dtype(cdt).itemsize
    flops = 2 * B * T * (Din * H + (kmax * H) * NC + NC * O)
    bytes_accessed = (B * T * Din * features.dtype.itemsize        # input
                      + B * T * O * 4                              # output
                      + (Din * H + kmax * H * NC + NC * O) * w_item
                      + (H + NC + O) * 4)                          # biases
    cost = pl.CostEstimate(flops=flops, transcendentals=0,
                           bytes_accessed=bytes_accessed)

    out2 = pl.pallas_call(
        kernel,
        out_shape=jax.ShapeDtypeStruct((B * T, O), jnp.float32),
        grid_spec=pltpu.PrefetchScalarGridSpec(
            num_scalar_prefetch=0,
            grid=(nb,),
            in_specs=[
                pl.BlockSpec((Mrows, Din), lambda i: (i, 0)),
                full_spec(packed["w_in_t"]),
                full_spec(packed["b_in"]),
                full_spec(packed["w_bank"]),
                full_spec(packed["b_bank"]),
                full_spec(packed["w_out_t"]),
                full_spec(packed["b_out"]),
            ],
            out_specs=pl.BlockSpec((Mrows, O), lambda i: (i, 0)),
        ),
        compiler_params=pltpu.CompilerParams(
            dimension_semantics=("parallel",),
        ),
        cost_estimate=cost,
    )(x2, packed["w_in_t"], packed["b_in"], packed["w_bank"],
      packed["b_bank"], packed["w_out_t"], packed["b_out"])

    return out2.reshape(B, T, O)


def convbank_reference(features, raw, kernels):
    """Pure-JAX f32 reference mirroring the PyTorch module (eval / p=0 dropout)."""
    w_in, b_in = raw["w_in"], raw["b_in"]
    h = jnp.maximum(features @ w_in.T + b_in, 0.0)                   # (B, T, H)
    hc = jnp.transpose(h, (0, 2, 1))                                 # (B, H, T)
    feats = []
    for i, k in enumerate(kernels):
        wk, bk = raw["w_convs"][i], raw["b_convs"][i]                # (C, H, k), (C,)
        y = lax.conv_general_dilated(
            hc, wk, window_strides=(1,), padding=[(k // 2, k // 2)],
            dimension_numbers=("NCH", "OIH", "NCH"))
        feats.append(y + bk[None, :, None])
    c = jnp.concatenate(feats, axis=1)                               # (B, C*nk, T)
    c = jnp.maximum(jnp.transpose(c, (0, 2, 1)), 0.0)                # (B, T, C*nk)
    return c @ raw["w_out"].T + raw["b_out"]


if __name__ == "__main__":
    # Module config (small, consistent with ConvBank.__init__)
    input_dim = 32
    hidden_size = 32
    cnn_size = 32
    kernels = (3, 5, 7)          # odd kernels so each Conv1d keeps length T
    output_class_num = 8
    B, T = 2, 16
    compute_dtype = jnp.bfloat16  # bf16 operands, f32 accumulation

    key = jax.random.PRNGKey(0)
    ks = jax.random.split(key, 4 + 2 * len(kernels) + 1)

    def uinit(k, shape, fan_in):
        bound = 1.0 / np.sqrt(fan_in)
        return jax.random.uniform(k, shape, jnp.float32, -bound, bound)

    raw = {
        "w_in": uinit(ks[0], (hidden_size, input_dim), input_dim),
        "b_in": uinit(ks[1], (hidden_size,), input_dim),
        "w_convs": [], "b_convs": [],
        "w_out": uinit(ks[2], (output_class_num, cnn_size * len(kernels)),
                       cnn_size * len(kernels)),
        "b_out": uinit(ks[3], (output_class_num,), cnn_size * len(kernels)),
    }
    for i, k in enumerate(kernels):
        raw["w_convs"].append(
            uinit(ks[4 + 2 * i], (cnn_size, hidden_size, k), hidden_size * k))
        raw["b_convs"].append(
            uinit(ks[5 + 2 * i], (cnn_size,), hidden_size * k))

    packed = pack_convbank_params(raw, kernels, compute_dtype=compute_dtype)
    features = jax.random.normal(ks[-1], (B, T, input_dim), jnp.float32)

    out = jax.block_until_ready(convbank_forward(features, packed))
    ref = jax.block_until_ready(convbank_reference(features, raw, kernels))

    assert out.shape == (B, T, output_class_num), out.shape
    if compute_dtype == jnp.bfloat16:
        rtol, atol = 5e-2, 5e-2   # bf16 operands / f32 accumulation
    else:
        rtol, atol = 1e-4, 1e-4
    np.testing.assert_allclose(np.asarray(out), np.asarray(ref),
                               rtol=rtol, atol=atol)
    print("KERNEL_OK")
</pallas_src>

<mosaic_0001>
module attributes {stable_mosaic.version = 11 : i64} {
  func.func @kernel(%arg0: i32, %arg1: memref<32x32xf32, #tpu.memory_space<vmem>>, %arg2: memref<32x32xbf16, #tpu.memory_space<vmem>>, %arg3: memref<1x32xf32, #tpu.memory_space<vmem>>, %arg4: memref<224x96xbf16, #tpu.memory_space<vmem>>, %arg5: memref<1x96xf32, #tpu.memory_space<vmem>>, %arg6: memref<96x8xbf16, #tpu.memory_space<vmem>>, %arg7: memref<1x8xf32, #tpu.memory_space<vmem>>, %arg8: memref<32x8xf32, #tpu.memory_space<vmem>>) attributes {dimension_semantics = [#tpu.dimension_semantics<parallel>], iteration_bounds = array<i64: 1>, scalar_prefetch = 0 : i64, scratch_operands = 0 : i64, tpu.core_type = #tpu.core_type<tc>, window_params = [{transform_indices = @transform_0, window_bounds = array<i64: 32, 32>}, {pipeline_mode = #tpu.pipeline_mode<synchronous>, transform_indices = @transform_1, window_bounds = array<i64: 32, 32>}, {pipeline_mode = #tpu.pipeline_mode<synchronous>, transform_indices = @transform_2, window_bounds = array<i64: 1, 32>}, {pipeline_mode = #tpu.pipeline_mode<synchronous>, transform_indices = @transform_3, window_bounds = array<i64: 224, 96>}, {pipeline_mode = #tpu.pipeline_mode<synchronous>, transform_indices = @transform_4, window_bounds = array<i64: 1, 96>}, {pipeline_mode = #tpu.pipeline_mode<synchronous>, transform_indices = @transform_5, window_bounds = array<i64: 96, 8>}, {pipeline_mode = #tpu.pipeline_mode<synchronous>, transform_indices = @transform_6, window_bounds = array<i64: 1, 8>}, {transform_indices = @transform_7, window_bounds = array<i64: 32, 8>}]} {
    %c0 = arith.constant 0 : index
    %c0_0 = arith.constant 0 : index
    %0 = vector.load %arg1[%c0, %c0_0] : memref<32x32xf32, #tpu.memory_space<vmem>>, vector<32x32xf32>
    %1 = arith.truncf %0 : vector<32x32xf32> to vector<32x32xbf16>
    %c0_1 = arith.constant 0 : index
    %c0_2 = arith.constant 0 : index
    %2 = vector.load %arg2[%c0_1, %c0_2] : memref<32x32xbf16, #tpu.memory_space<vmem>>, vector<32x32xbf16>
    %cst = arith.constant dense<0.000000e+00> : vector<32x32xf32>
    %3 = tpu.matmul %1, %2, %cst {dimension_numbers = #tpu.dot_dimension_numbers<[1], [0], [0], [1], [0, 0, 1, 1], [], []>} : vector<32x32xbf16>, vector<32x32xbf16>, vector<32x32xf32> -> vector<32x32xf32>
    %c0_3 = arith.constant 0 : index
    %c0_4 = arith.constant 0 : index
    %4 = vector.load %arg3[%c0_3, %c0_4] : memref<1x32xf32, #tpu.memory_space<vmem>>, vector<1x32xf32>
    %5 = vector.broadcast %4 : vector<1x32xf32> to vector<32x32xf32>
    %6 = arith.addf %3, %5 : vector<32x32xf32>
    %cst_5 = arith.constant 0.000000e+00 : f32
    %7 = vector.broadcast %cst_5 : f32 to vector<32x32xf32>
    %8 = arith.maximumf %6, %7 : vector<32x32xf32>
    %9 = tpu.iota {dimensions = array<i32: 1>} : vector<2x16x32xi32>
    %10 = vector.shape_cast %9 : vector<2x16x32xi32> to vector<32x32xi32>
    %cst_6 = arith.constant 0.000000e+00 : f32
    %11 = vector.broadcast %cst_6 : f32 to vector<3x32xf32>
    %12 = vector.extract_strided_slice %8 {offsets = [0, 0], sizes = [29, 32], strides = [1, 1]} : vector<32x32xf32> to vector<29x32xf32>
    %13 = tpu.concatenate %11, %12 in 0 : vector<3x32xf32>, vector<29x32xf32> -> vector<32x32xf32>
    %c-3_i32 = arith.constant -3 : i32
    %14 = vector.broadcast %c-3_i32 : i32 to vector<32x32xi32>
    %15 = arith.addi %10, %14 : vector<32x32xi32>
    %c0_i32 = arith.constant 0 : i32
    %16 = vector.broadcast %c0_i32 : i32 to vector<32x32xi32>
    %17 = arith.cmpi sge, %15, %16 : vector<32x32xi32>
    %c-3_i32_7 = arith.constant -3 : i32
    %18 = vector.broadcast %c-3_i32_7 : i32 to vector<32x32xi32>
    %19 = arith.addi %10, %18 : vector<32x32xi32>
    %c16_i32 = arith.constant 16 : i32
    %20 = vector.broadcast %c16_i32 : i32 to vector<32x32xi32>
    %21 = arith.cmpi slt, %19, %20 : vector<32x32xi32>
    %22 = arith.andi %17, %21 : vector<32x32xi1>
    %cst_8 = arith.constant 0.000000e+00 : f32
    %23 = vector.broadcast %cst_8 : f32 to vector<32x32xf32>
    %24 = arith.select %22, %13, %23 : vector<32x32xi1>, vector<32x32xf32>
    %25 = arith.truncf %24 : vector<32x32xf32> to vector<32x32xbf16>
    %cst_9 = arith.constant 0.000000e+00 : f32
    %26 = vector.broadcast %cst_9 : f32 to vector<2x32xf32>
    %27 = vector.extract_strided_slice %8 {offsets = [0, 0], sizes = [30, 32], strides = [1, 1]} : vector<32x32xf32> to vector<30x32xf32>
    %28 = tpu.concatenate %26, %27 in 0 : vector<2x32xf32>, vector<30x32xf32> -> vector<32x32xf32>
    %c-2_i32 = arith.constant -2 : i32
    %29 = vector.broadcast %c-2_i32 : i32 to vector<32x32xi32>
    %30 = arith.addi %10, %29 : vector<32x32xi32>
    %c0_i32_10 = arith.constant 0 : i32
    %31 = vector.broadcast %c0_i32_10 : i32 to vector<32x32xi32>
    %32 = arith.cmpi sge, %30, %31 : vector<32x32xi32>
    %c-2_i32_11 = arith.constant -2 : i32
    %33 = vector.broadcast %c-2_i32_11 : i32 to vector<32x32xi32>
    %34 = arith.addi %10, %33 : vector<32x32xi32>
    %c16_i32_12 = arith.constant 16 : i32
    %35 = vector.broadcast %c16_i32_12 : i32 to vector<32x32xi32>
    %36 = arith.cmpi slt, %34, %35 : vector<32x32xi32>
    %37 = arith.andi %32, %36 : vector<32x32xi1>
    %cst_13 = arith.constant 0.000000e+00 : f32
    %38 = vector.broadcast %cst_13 : f32 to vector<32x32xf32>
    %39 = arith.select %37, %28, %38 : vector<32x32xi1>, vector<32x32xf32>
    %40 = arith.truncf %39 : vector<32x32xf32> to vector<32x32xbf16>
    %cst_14 = arith.constant 0.000000e+00 : f32
    %41 = vector.broadcast %cst_14 : f32 to vector<1x32xf32>
    %42 = vector.extract_strided_slice %8 {offsets = [0, 0], sizes = [31, 32], strides = [1, 1]} : vector<32x32xf32> to vector<31x32xf32>
    %43 = tpu.concatenate %41, %42 in 0 : vector<1x32xf32>, vector<31x32xf32> -> vector<32x32xf32>
    %c-1_i32 = arith.constant -1 : i32
    %44 = vector.broadcast %c-1_i32 : i32 to vector<32x32xi32>
    %45 = arith.addi %10, %44 : vector<32x32xi32>
    %c0_i32_15 = arith.constant 0 : i32
    %46 = vector.broadcast %c0_i32_15 : i32 to vector<32x32xi32>
    %47 = arith.cmpi sge, %45, %46 : vector<32x32xi32>
    %c-1_i32_16 = arith.constant -1 : i32
    %48 = vector.broadcast %c-1_i32_16 : i32 to vector<32x32xi32>
    %49 = arith.addi %10, %48 : vector<32x32xi32>
    %c16_i32_17 = arith.constant 16 : i32
    %50 = vector.broadcast %c16_i32_17 : i32 to vector<32x32xi32>
    %51 = arith.cmpi slt, %49, %50 : vector<32x32xi32>
    %52 = arith.andi %47, %51 : vector<32x32xi1>
    %cst_18 = arith.constant 0.000000e+00 : f32
    %53 = vector.broadcast %cst_18 : f32 to vector<32x32xf32>
    %54 = arith.select %52, %43, %53 : vector<32x32xi1>, vector<32x32xf32>
    %55 = arith.truncf %54 : vector<32x32xf32> to vector<32x32xbf16>
    %56 = arith.truncf %8 : vector<32x32xf32> to vector<32x32xbf16>
    %57 = vector.extract_strided_slice %8 {offsets = [1, 0], sizes = [31, 32], strides = [1, 1]} : vector<32x32xf32> to vector<31x32xf32>
    %cst_19 = arith.constant 0.000000e+00 : f32
    %58 = vector.broadcast %cst_19 : f32 to vector<1x32xf32>
    %59 = tpu.concatenate %57, %58 in 0 : vector<31x32xf32>, vector<1x32xf32> -> vector<32x32xf32>
    %c1_i32 = arith.constant 1 : i32
    %60 = vector.broadcast %c1_i32 : i32 to vector<32x32xi32>
    %61 = arith.addi %10, %60 : vector<32x32xi32>
    %c0_i32_20 = arith.constant 0 : i32
    %62 = vector.broadcast %c0_i32_20 : i32 to vector<32x32xi32>
    %63 = arith.cmpi sge, %61, %62 : vector<32x32xi32>
    %c1_i32_21 = arith.constant 1 : i32
    %64 = vector.broadcast %c1_i32_21 : i32 to vector<32x32xi32>
    %65 = arith.addi %10, %64 : vector<32x32xi32>
    %c16_i32_22 = arith.constant 16 : i32
    %66 = vector.broadcast %c16_i32_22 : i32 to vector<32x32xi32>
    %67 = arith.cmpi slt, %65, %66 : vector<32x32xi32>
    %68 = arith.andi %63, %67 : vector<32x32xi1>
    %cst_23 = arith.constant 0.000000e+00 : f32
    %69 = vector.broadcast %cst_23 : f32 to vector<32x32xf32>
    %70 = arith.select %68, %59, %69 : vector<32x32xi1>, vector<32x32xf32>
    %71 = arith.truncf %70 : vector<32x32xf32> to vector<32x32xbf16>
    %72 = vector.extract_strided_slice %8 {offsets = [2, 0], sizes = [30, 32], strides = [1, 1]} : vector<32x32xf32> to vector<30x32xf32>
    %cst_24 = arith.constant 0.000000e+00 : f32
    %73 = vector.broadcast %cst_24 : f32 to vector<2x32xf32>
    %74 = tpu.concatenate %72, %73 in 0 : vector<30x32xf32>, vector<2x32xf32> -> vector<32x32xf32>
    %c2_i32 = arith.constant 2 : i32
    %75 = vector.broadcast %c2_i32 : i32 to vector<32x32xi32>
    %76 = arith.addi %10, %75 : vector<32x32xi32>
    %c0_i32_25 = arith.constant 0 : i32
    %77 = vector.broadcast %c0_i32_25 : i32 to vector<32x32xi32>
    %78 = arith.cmpi sge, %76, %77 : vector<32x32xi32>
    %c2_i32_26 = arith.constant 2 : i32
    %79 = vector.broadcast %c2_i32_26 : i32 to vector<32x32xi32>
    %80 = arith.addi %10, %79 : vector<32x32xi32>
    %c16_i32_27 = arith.constant 16 : i32
    %81 = vector.broadcast %c16_i32_27 : i32 to vector<32x32xi32>
    %82 = arith.cmpi slt, %80, %81 : vector<32x32xi32>
    %83 = arith.andi %78, %82 : vector<32x32xi1>
    %cst_28 = arith.constant 0.000000e+00 : f32
    %84 = vector.broadcast %cst_28 : f32 to vector<32x32xf32>
    %85 = arith.select %83, %74, %84 : vector<32x32xi1>, vector<32x32xf32>
    %86 = arith.truncf %85 : vector<32x32xf32> to vector<32x32xbf16>
    %87 = vector.extract_strided_slice %8 {offsets = [3, 0], sizes = [29, 32], strides = [1, 1]} : vector<32x32xf32> to vector<29x32xf32>
    %cst_29 = arith.constant 0.000000e+00 : f32
    %88 = vector.broadcast %cst_29 : f32 to vector<3x32xf32>
    %89 = tpu.concatenate %87, %88 in 0 : vector<29x32xf32>, vector<3x32xf32> -> vector<32x32xf32>
    %c3_i32 = arith.constant 3 : i32
    %90 = vector.broadcast %c3_i32 : i32 to vector<32x32xi32>
    %91 = arith.addi %10, %90 : vector<32x32xi32>
    %c0_i32_30 = arith.constant 0 : i32
    %92 = vector.broadcast %c0_i32_30 : i32 to vector<32x32xi32>
    %93 = arith.cmpi sge, %91, %92 : vector<32x32xi32>
    %c3_i32_31 = arith.constant 3 : i32
    %94 = vector.broadcast %c3_i32_31 : i32 to vector<32x32xi32>
    %95 = arith.addi %10, %94 : vector<32x32xi32>
    %c16_i32_32 = arith.constant 16 : i32
    %96 = vector.broadcast %c16_i32_32 : i32 to vector<32x32xi32>
    %97 = arith.cmpi slt, %95, %96 : vector<32x32xi32>
    %98 = arith.andi %93, %97 : vector<32x32xi1>
    %cst_33 = arith.constant 0.000000e+00 : f32
    %99 = vector.broadcast %cst_33 : f32 to vector<32x32xf32>
    %100 = arith.select %98, %89, %99 : vector<32x32xi1>, vector<32x32xf32>
    %101 = arith.truncf %100 : vector<32x32xf32> to vector<32x32xbf16>
    %102 = tpu.concatenate %25, %40, %55, %56, %71, %86, %101 in 1 : vector<32x32xbf16>, vector<32x32xbf16>, vector<32x32xbf16>, vector<32x32xbf16>, vector<32x32xbf16>, vector<32x32xbf16>, vector<32x32xbf16> -> vector<32x224xbf16>
    %c0_34 = arith.constant 0 : index
    %c0_35 = arith.constant 0 : index
    %103 = vector.load %arg4[%c0_34, %c0_35] : memref<224x96xbf16, #tpu.memory_space<vmem>>, vector<224x96xbf16>
    %cst_36 = arith.constant dense<0.000000e+00> : vector<32x96xf32>
    %104 = tpu.matmul %102, %103, %cst_36 {dimension_numbers = #tpu.dot_dimension_numbers<[1], [0], [0], [1], [0, 0, 1, 1], [], []>} : vector<32x224xbf16>, vector<224x96xbf16>, vector<32x96xf32> -> vector<32x96xf32>
    %c0_37 = arith.constant 0 : index
    %c0_38 = arith.constant 0 : index
    %105 = vector.load %arg5[%c0_37, %c0_38] : memref<1x96xf32, #tpu.memory_space<vmem>>, vector<1x96xf32>
    %106 = vector.broadcast %105 : vector<1x96xf32> to vector<32x96xf32>
    %107 = arith.addf %104, %106 : vector<32x96xf32>
    %cst_39 = arith.constant 0.000000e+00 : f32
    %108 = vector.broadcast %cst_39 : f32 to vector<32x96xf32>
    %109 = arith.maximumf %107, %108 : vector<32x96xf32>
    %110 = arith.truncf %109 : vector<32x96xf32> to vector<32x96xbf16>
    %c0_40 = arith.constant 0 : index
    %c0_41 = arith.constant 0 : index
    %111 = vector.load %arg6[%c0_40, %c0_41] : memref<96x8xbf16, #tpu.memory_space<vmem>>, vector<96x8xbf16>
    %cst_42 = arith.constant dense<0.000000e+00> : vector<32x8xf32>
    %112 = tpu.matmul %110, %111, %cst_42 {dimension_numbers = #tpu.dot_dimension_numbers<[1], [0], [0], [1], [0, 0, 1, 1], [], []>} : vector<32x96xbf16>, vector<96x8xbf16>, vector<32x8xf32> -> vector<32x8xf32>
    %c0_43 = arith.constant 0 : index
    %c0_44 = arith.constant 0 : index
    %113 = vector.load %arg7[%c0_43, %c0_44] : memref<1x8xf32, #tpu.memory_space<vmem>>, vector<1x8xf32>
    %114 = vector.broadcast %113 : vector<1x8xf32> to vector<32x8xf32>
    %115 = arith.addf %112, %114 : vector<32x8xf32>
    %c0_45 = arith.constant 0 : index
    %c0_46 = arith.constant 0 : index
    %116 = vector.load %arg8[%c0_45, %c0_46] : memref<32x8xf32, #tpu.memory_space<vmem>>, vector<32x8xf32>
    tpu.vector_store %arg8[%c0_45, %c0_46], %115 {strides = array<i32>} : memref<32x8xf32, #tpu.memory_space<vmem>>, vector<32x8xf32>,
    return
  }
  func.func @transform_0(%arg0: i32) -> (i32, i32) {
    %c0_i32 = arith.constant 0 : i32
    %c0_i32_0 = arith.constant 0 : i32
    return %arg0, %c0_i32 : i32, i32
  }
  func.func @transform_1(%arg0: i32) -> (i32, i32) {
    %c0_i32 = arith.constant 0 : i32
    %c0_i32_0 = arith.constant 0 : i32
    %c0_i32_1 = arith.constant 0 : i32
    return %c0_i32, %c0_i32_0 : i32, i32
  }
  func.func @transform_2(%arg0: i32) -> (i32, i32) {
    %c0_i32 = arith.constant 0 : i32
    %c0_i32_0 = arith.constant 0 : i32
    %c0_i32_1 = arith.constant 0 : i32
    return %c0_i32, %c0_i32_0 : i32, i32
  }
  func.func @transform_3(%arg0: i32) -> (i32, i32) {
    %c0_i32 = arith.constant 0 : i32
    %c0_i32_0 = arith.constant 0 : i32
    %c0_i32_1 = arith.constant 0 : i32
    return %c0_i32, %c0_i32_0 : i32, i32
  }
  func.func @transform_4(%arg0: i32) -> (i32, i32) {
    %c0_i32 = arith.constant 0 : i32
    %c0_i32_0 = arith.constant 0 : i32
    %c0_i32_1 = arith.constant 0 : i32
    return %c0_i32, %c0_i32_0 : i32, i32
  }
  func.func @transform_5(%arg0: i32) -> (i32, i32) {
    %c0_i32 = arith.constant 0 : i32
    %c0_i32_0 = arith.constant 0 : i32
    %c0_i32_1 = arith.constant 0 : i32
    return %c0_i32, %c0_i32_0 : i32, i32
  }
  func.func @transform_6(%arg0: i32) -> (i32, i32) {
    %c0_i32 = arith.constant 0 : i32
    %c0_i32_0 = arith.constant 0 : i32
    %c0_i32_1 = arith.constant 0 : i32
    return %c0_i32, %c0_i32_0 : i32, i32
  }
  func.func @transform_7(%arg0: i32) -> (i32, i32) {
    %c0_i32 = arith.constant 0 : i32
    %c0_i32_0 = arith.constant 0 : i32
    return %arg0, %c0_i32 : i32, i32
  }
}

</mosaic_0001>

<bundles_post_ra>
// kernel: tpu_custom_call.1
= control target key start
LH: loop header
LB: loop body
LE: loop exit
PB: predicated region body
PF: predicated region fallthrough
CT: control target
= control target key end

     0   :  { %vm53_vm0 = vcmask 261120   ;;  %v83_v8 = vlaneseq  ;;  %vm119_vm1 = vcmask 1041408   ;;  %vm90_vm2 = vcmask 1042432   ;;  %s768_s14 = smov 64   ;;  %s1098_s1 = inlined_call_operand.vmem [shape: bf16[32,32], index: 1, kind: input, shape index: {}]   ;;  %s1099_s0 = inlined_call_operand.vmem [shape: f32[32,32], index: 0, kind: input, shape index: {}]   ;;  %s1100_s2 = inlined_call_operand.vmem [shape: f32[1,32], index: 2, kind: input, shape index: {}]   ;;  %s1101_s4 = inlined_call_operand.vmem [shape: f32[1,96], index: 4, kind: input, shape index: {}]   ;;  %s1102_s3 = inlined_call_operand.vmem [shape: bf16[224,96], index: 3, kind: input, shape index: {}]   ;;  %s1103_s6 = inlined_call_operand.vmem [shape: f32[1,8], index: 6, kind: input, shape index: {}]   ;;  %s1104_s5 = inlined_call_operand.vmem [shape: bf16[96,8], index: 5, kind: input, shape index: {}]   ;;  %s1105_s7 = inlined_call_operand.vmem [shape: f32[32,8], index: 7, kind: output, shape index: {}]  }
   0x1   :  { %v731_v0 = vld [vmem:[%s1098_s1 + $0x8] sm:$0xff]  ;;  %v730_v1 = vld [vmem:[%s1098_s1] sm:$0xff]  ;;  %v29_v5 = vld [vmem:[%s1099_s0 + $0x10] sm:$0xff]  ;;  %vm148_vm5 = vcmask 1040384   ;;  %vm210_vm7 = vcmask 1045504   ;;  %vm239_vm8 = vcmask 1044480  }
   0x2   :  { %66 = vmatpush.bf16.msra.mxu0 %v731_v0  ;;  %v27_v2 = vld [vmem:[%s1099_s0] sm:$0xff]  ;;  %v28_v3 = vld [vmem:[%s1099_s0 + $0x8] sm:$0xff]  ;;  %v30_v6 = vld [vmem:[%s1099_s0 + $0x18] sm:$0xff]  ;;  %v84_v10 = vshrl.u32 %v83_v8, 7  ;;  %vm181_vm9 = vcmask 1046528   ;;  %s766_s0 = smov 96  }
   0x3   :  { %v31_v4 = vpack.c.bf16 %v28_v3, %v27_v2  ;;  %v32_v7 = vpack.c.bf16 %v30_v6, %v29_v5  ;;  %v832_v9 = vld [vmem:[%s1100_s2] ss:$0 sm:$0xff]  ;;  %s767_s2 = smov 32   ;;  %vm364_vm13 = vcmask 523264   ;;  %vm369_vm14 = vcmask 785408  }
   0x4   :  { %v835_v13 = vadd.s32 4294967293, %v84_v10  ;;  %v839_v15 = vadd.s32 4294967294, %v84_v10  ;;  %v85_v16 = vadd.s32 8, %v84_v10  ;;  %v844_v19 = vadd.s32 4294967295, %v84_v10 }
   0x5   :  { %vm627_vm15 = vcmask 64512  }
   0x6   :  { %67 = vmatpush.bf16.msra.mxu0 %v730_v1  ;;  %vm105_vm3 = vcmp.ge.s32.totalorder %v835_v13, 0  ;;  %vm134_vm4 = vcmp.ge.s32.totalorder %v839_v15, 0  ;;  %v848_v22 = vadd.s32 2, %v85_v16  ;;  %v854_v26 = vadd.s32 3, %v85_v16 }
   0x7   :  { %vm163_vm6 = vcmp.ge.s32.totalorder %v844_v19, 0  ;;  %v865_v32 = vadd.s32 1, %v85_v16 }
   0x8   :  { %vm228_vm10 = vcmp.lt.s32.totalorder %v848_v22, 16  ;;  %vm257_vm11 = vcmp.lt.s32.totalorder %v854_v26, 16 }
   0x9   :  { %644 = vmatmul.msk.bf16.vlgmr.msra.gmra.mxu0 %vm53_vm0, %v31_v4  ;;  %vm199_vm12 = vcmp.lt.s32.totalorder %v865_v32, 16 }
  0x19   :  { %645 = vmatmul.msk.bf16.gmra.mxu0 %vm53_vm0, %v32_v7 }
  0x86   :  { %v69_v11 = vpop.f32.mrf.mxu0 }
  0x87   :  { %v70_v12 = vadd.f32 %v832_v9, %v69_v11 }
  0x89   :  { %v837_v14 = vmax.f32 %v70_v12, 0.0 }
  0x8b   :  { %v120_v17 = vrot.slane %v837_v14, 6  ;;  %v91_v18 = vrot.slane %v837_v14, 5  ;;  %v177_v25 = vpack.c.bf16 %v837_v14, %v837_v14  ;;  %v149_v28 = vrot.slane %v837_v14, 7 }
  0x8c   :  { %v211_v31 = vrot.slane %v837_v14, 2  ;;  %v240_v47 = vrot.slane %v837_v14, 3  ;;  %v182_v49 = vrot.slane %v837_v14, 1 }
  0x8d   :  { %v131_v21 = vsel %vm119_vm1, 0.0, %v120_v17  ;;  %v102_v23 = vsel %vm90_vm2, 0.0, %v91_v18  ;;  %v310_v34 = vunpack.c.l.b16 %v177_v25  ;;  %v160_v38 = vsel %vm148_vm5, 0.0, %v149_v28 }
  0x8e   :  { %v71_v20 = vpop.f32.mrf.mxu0  ;;  %v111_v27 = vsel %vm105_vm3, %v102_v23, 0.0  ;;  %v140_v30 = vsel %vm134_vm4, %v131_v21, 0.0  ;;  %v169_v56 = vsel %vm163_vm6, %v160_v38, 0.0 }
  0x8f   :  { %v72_v24 = vadd.f32 %v832_v9, %v71_v20  ;;  %v144_v37 = vpack.c.bf16 %v140_v30, %v140_v30  ;;  %v115_v40 = vpack.c.bf16 %v111_v27, %v111_v27  ;;  %v173_v3 = vpack.c.bf16 %v169_v56, %v169_v56 }
  0x91   :  { %v859_v29 = vmax.f32 %v72_v24, 0.0  ;;  %v282_v54 = vunpack.c.l.b16 %v144_v37  ;;  %v894_v60 = vunpack.c.l.b16 %v115_v40  ;;  %v296_v24 = vunpack.c.l.b16 %v173_v3 }
  0x93   :  { %v178_v33 = vpack.c.bf16 %v859_v29, %v859_v29  ;;  %v121_v35 = vrot.slane %v859_v29, 6  ;;  %v150_v36 = vrot.slane %v859_v29, 7  ;;  %v92_v39 = vrot.slane %v859_v29, 5 }
  0x94   :  { %v212_v43 = vrot.slane %v859_v29, 2  ;;  %v183_v44 = vrot.slane %v859_v29, 1  ;;  %v241_v48 = vrot.slane %v859_v29, 3 }
  0x95   :  { %v311_v41 = vunpack.c.l.b16 %v178_v33  ;;  %v122_v42 = vsel %vm119_vm1, %v120_v17, %v121_v35  ;;  %v151_v52 = vsel %vm148_vm5, %v149_v28, %v150_v36  ;;  %v93_v53 = vsel %vm90_vm2, %v91_v18, %v92_v39 }
  0x96   :  { %v74_v45 = vpop.f32.mrf.mxu0  ;;  %v145_v46 = vpack.c.bf16 %v122_v42, %v122_v42  ;;  %v116_v57 = vpack.c.bf16 %v93_v53, %v93_v53  ;;  %v213_v59 = vsel %vm210_vm7, %v211_v31, %v212_v43  ;;  %v897_v61 = vsel %vm181_vm9, %v182_v49, %v183_v44 }
  0x97   :  { %v75_v50 = vadd.f32 %v832_v9, %v74_v45  ;;  %v314_v51 = vpack.c.b16 %v311_v41, %v310_v34  ;;  %v174_v63 = vpack.c.bf16 %v151_v52, %v151_v52  ;;  %v242_v0 = vsel %vm239_vm8, %v240_v47, %v241_v48 }
  0x98   :  { %v283_v55 = vunpack.c.l.b16 %v145_v46  ;;  %v900_v1 = vunpack.c.l.b16 %v116_v57  ;;  %v235_v6 = vpack.c.bf16 %v213_v59, %v213_v59  ;;  %v264_v14 = vpack.c.bf16 %v242_v0, %v242_v0 }
  0x99   :  { %v890_v58 = vmax.f32 %v75_v50, 0.0  ;;  %316 = vrot.lane.b32.xlu2 %v314_v51, %s766_s0  ;;  %v297_v18 = vunpack.c.l.b16 %v174_v63 }
  0x9a   :  { %v286_v62 = vpack.c.b16 %v283_v55, %v282_v54  ;;  %v276_v8 = vpack.c.b16 %v900_v1, %v894_v60  ;;  %v334_v33 = vunpack.c.l.b16 %v235_v6  ;;  %v348_v38 = vunpack.c.l.b16 %v264_v14 }
  0x9b   :  { %v123_v2 = vrot.slane %v890_v58, 6  ;;  %v214_v4 = vrot.slane %v890_v58, 2  ;;  %v243_v5 = vrot.slane %v890_v58, 3  ;;  %v185_v7 = vrot.slane %v890_v58, 1 }
  0x9c   :  { %288 = vrot.lane.b32.xlu1 %v286_v62, %s767_s2  ;;  %v152_v28 = vrot.slane %v890_v58, 7  ;;  %v94_v30 = vrot.slane %v890_v58, 5  ;;  %v300_v37 = vpack.c.b16 %v297_v18, %v296_v24 }
  0x9d   :  { %v124_v10 = vsel %vm119_vm1, %v121_v35, %v123_v2  ;;  %v215_v11 = vsel %vm210_vm7, %v212_v43, %v214_v4  ;;  %v244_v12 = vsel %vm239_vm8, %v241_v48, %v243_v5  ;;  %v186_v15 = vsel %vm181_vm9, %v183_v44, %v185_v7 }
  0x9e   :  { %v142_v16 = vsel %vm134_vm4, %v124_v10, 0.0  ;;  %v76_v17 = vpop.f32.mrf.mxu0  ;;  %v232_v20 = vsel %vm228_vm10, %v215_v11, 0.0  ;;  %v261_v21 = vsel %vm257_vm11, %v244_v12, 0.0  ;;  %v95_v40 = vsel %vm90_vm2, %v92_v39, %v94_v30 }
  0x9f   :  { %v77_v23 = vadd.f32 %v832_v9, %v76_v17  ;;  %v236_v25 = vpack.c.bf16 %v232_v20, %v232_v20  ;;  %v146_v27 = vpack.c.bf16 %v142_v16, %v142_v16  ;;  %v265_v35 = vpack.c.bf16 %v261_v21, %v261_v21 }
  0xa0   :  { %v203_v9 = vsel %vm199_vm12, %v186_v15, 0.0  ;;  %v206_v44 = vpack.c.bf16 %v897_v61, %v897_v61  ;;  %v153_v47 = vsel %vm148_vm5, %v150_v36, %v152_v28  ;;  %v113_v20 = vsel %vm105_vm3, %v95_v40, 0.0 }
  0xa1   :  { %v923_v31 = vmax.f32 %v77_v23, 0.0  ;;  %v335_v34 = vunpack.c.l.b16 %v236_v25  ;;  %v284_v45 = vunpack.c.l.b16 %v146_v27  ;;  %v349_v50 = vunpack.c.l.b16 %v265_v35 }
  0xa2   :  { %v207_v57 = vpack.c.bf16 %v203_v9, %v203_v9  ;;  %v963_v19 = vunpack.c.l.b16 %v206_v44  ;;  %v117_v24 = vpack.c.bf16 %v113_v20, %v113_v20  ;;  %v764_v20 = vld [vmem:[%s1101_s4] ss:$0 sm:$0xff] }
  0xa3   :  { %v216_v41 = vrot.slane %v923_v31, 2  ;;  %v338_v42 = vpack.c.b16 %v335_v34, %v334_v33  ;;  %v125_v43 = vrot.slane %v923_v31, 6  ;;  %v245_v46 = vrot.slane %v923_v31, 3 }
  0xa4   :  { %302 = vrot.lane.b32.xlu1 %v300_v37, %s768_s14  ;;  %v154_v39 = vrot.slane %v923_v31, 7  ;;  %v187_v29 = vrot.slane %v923_v31, 1  ;;  %v352_v0 = vpack.c.b16 %v349_v50, %v348_v38  ;;  %v961_v17 = vunpack.c.l.b16 %v207_v57  ;;  %v733_v50 = vld [vmem:[%s1102_s3 + $0x8] sm:$0xff] }
  0xa5   :  { %v222_v48 = vsel %vm210_vm7, %v216_v41, 0.0  ;;  %340 = vrot.lane.b32.xlu0 %v338_v42, %s767_s2  ;;  %v126_v49 = vsel %vm119_vm1, %v123_v2, %v125_v43  ;;  %v217_v51 = vsel %vm210_vm7, %v214_v4, %v216_v41  ;;  %v246_v36 = vsel %vm239_vm8, %v243_v5, %v245_v46 }
  0xa6   :  { %v234_v52 = vsel %vm228_vm10, %v222_v48, 0.0  ;;  %v147_v53 = vpack.c.bf16 %v126_v49, %v126_v49  ;;  %v237_v54 = vpack.c.bf16 %v217_v51, %v217_v51  ;;  %v251_v56 = vsel %vm239_vm8, %v245_v46, 0.0  ;;  %v736_v46 = vld [vmem:[%s1102_s3 + $0x20] sm:$0xff]  ;;  %v734_v48 = vld [vmem:[%s1102_s3 + $0x10] sm:$0xff]  ;;  %v743_v51 = vld [vmem:[%s1102_s3 + $0x58] sm:$0xff] }
  0xa7   :  { %v238_v55 = vpack.c.bf16 %v234_v52, %v234_v52  ;;  %v263_v62 = vsel %vm257_vm11, %v251_v56, 0.0  ;;  %v155_v63 = vsel %vm148_vm5, %v152_v28, %v154_v39  ;;  %v171_v2 = vsel %vm163_vm6, %v153_v47, 0.0  ;;  %v735_v47 = vld [vmem:[%s1102_s3 + $0x18] sm:$0xff]  ;;  %v745_v39 = vld [vmem:[%s1102_s3 + $0x68] sm:$0xff]  ;;  %v744_v49 = vld [vmem:[%s1102_s3 + $0x60] sm:$0xff] }
  0xa8   :  { %v285_v59 = vunpack.c.l.b16 %v147_v53  ;;  %v336_v61 = vunpack.c.l.b16 %v237_v54  ;;  %v266_v4 = vpack.c.bf16 %v246_v36, %v246_v36  ;;  %v188_v6 = vsel %vm181_vm9, %v185_v7, %v187_v29  ;;  %527 = vmatpush.bf16.msra.mxu2 %v745_v39  ;;  %v732_v52 = vld [vmem:[%s1102_s3] sm:$0xff]  ;;  %v742_v53 = vld [vmem:[%s1102_s3 + $0x50] sm:$0xff]  ;;  %v741_v54 = vld [vmem:[%s1102_s3 + $0x48] sm:$0xff] }
  0xa9   :  { %v337_v22 = vunpack.c.l.b16 %v238_v55  ;;  %v193_v5 = vsel %vm181_vm9, %v187_v29, 0.0  ;;  %v267_v11 = vpack.c.bf16 %v263_v62, %v263_v62  ;;  %v176_v12 = vpack.c.bf16 %v155_v63, %v155_v63  ;;  %v740_v29 = vld [vmem:[%s1102_s3 + $0x40] sm:$0xff] }
  0xaa   :  { %v287_v3 = vpack.c.b16 %v285_v59, %v284_v45  ;;  %v205_v26 = vsel %vm199_vm12, %v193_v5, 0.0  ;;  %v208_v14 = vpack.c.bf16 %v188_v6, %v188_v6  ;;  %v175_v7 = vpack.c.bf16 %v171_v2, %v171_v2  ;;  %v739_v45 = vld [vmem:[%s1102_s3 + $0x38] sm:$0xff] }
  0xab   :  { %v339_v10 = vpack.c.b16 %v337_v22, %v336_v61  ;;  %v209_v16 = vpack.c.bf16 %v205_v26, %v205_v26  ;;  %v96_v18 = vrot.slane %v923_v31, 5  ;;  %v328_v23 = vpack.c.b16 %v961_v17, %v963_v19  ;;  %506 = vmatpush.bf16.msrb.mxu0 %v739_v45  ;;  %752 = vmatpush.bf16.msra.mxu1 %v739_v45  ;;  %v750_v26 = vld [vmem:[%s1104_s5 + $0x20] sm:$0xff]  ;;  %v747_v17 = vld [vmem:[%s1104_s5 + $0x8] sm:$0xff] }
  0xac   :  { %290 = vrot.lane.b32.xlu1 %v287_v3, %s767_s2  ;;  %v970_v32 = vunpack.c.l.b16 %v208_v14  ;;  %v350_v25 = vunpack.c.l.b16 %v266_v4  ;;  %v351_v27 = vunpack.c.l.b16 %v267_v11  ;;  %v299_v28 = vunpack.c.l.b16 %v176_v12  ;;  %528 = vmatpush.bf16.msra.mxu2 %v744_v49  ;;  %v751_v12 = vld [vmem:[%s1104_s5 + $0x28] sm:$0xff]  ;;  %v749_v14 = vld [vmem:[%s1104_s5 + $0x18] sm:$0xff]  ;;  %v746_v19 = vld [vmem:[%s1104_s5] sm:$0xff] }
  0xad   :  { %354 = vrot.lane.b32.xlu0 %v352_v0, %s768_s14  ;;  %342 = vrot.lane.b32.xlu2 %v339_v10, %s767_s2  ;;  %v972_v21 = vunpack.c.l.b16 %v209_v16  ;;  %v97_v15 = vsel %vm90_vm2, %v94_v30, %v96_v18  ;;  %v298_v34 = vunpack.c.l.b16 %v175_v7  ;;  %v981_v35 = vunpack.c.l.b16 %v117_v24  ;;  %v748_v16 = vld [vmem:[%s1104_s5 + $0x10] sm:$0xff] }
  0xae   :  { %v118_v13 = vpack.c.bf16 %v97_v15, %v97_v15  ;;  %v353_v38 = vpack.c.b16 %v351_v27, %v350_v25  ;;  %v180_v40 = vpack.c.bf16 %v923_v31, %v923_v31  ;;  %v179_v30 = vpack.c.bf16 %v890_v58, %v890_v58  ;;  %v738_v31 = vld [vmem:[%s1102_s3 + $0x30] sm:$0xff]  ;;  %v737_v58 = vld [vmem:[%s1102_s3 + $0x28] sm:$0xff]  ;;  %610 = vmatpush.bf16.msra.mxu3 %v751_v12 }
  0xaf   :  { %v329_v33 = vpack.c.b16 %v972_v21, %v970_v32  ;;  %v301_v9 = vpack.c.b16 %v299_v28, %v298_v34  ;;  %507 = vmatpush.bf16.msrb.mxu0 %v738_v31  ;;  %753 = vmatpush.bf16.msra.mxu1 %v738_v31 }
  0xb0   :  { %v983_v37 = vunpack.c.l.b16 %v118_v13  ;;  %v313_v42 = vunpack.c.l.b16 %v180_v40  ;;  %v312_v43 = vunpack.c.l.b16 %v179_v30  ;;  %529 = vmatpush.bf16.msra.mxu2 %v743_v51 }
  0xb2   :  { %v277_v41 = vpack.c.b16 %v983_v37, %v981_v35  ;;  %v315_v44 = vpack.c.b16 %v313_v42, %v312_v43  ;;  %611 = vmatpush.bf16.msra.mxu3 %v750_v26 }
  0xb3   :  { %508 = vmatpush.bf16.msrb.mxu0 %v737_v58  ;;  %754 = vmatpush.bf16.msra.mxu1 %v737_v58 }
  0xb4   :  { %530 = vmatpush.bf16.msra.mxu2 %v742_v53 }
  0xb5   :  { %356 = vrot.lane.b32.xlu0 %v353_v38, %s768_s14  ;;  %304 = vrot.lane.b32.xlu2 %v301_v9, %s768_s14 }
  0xb6   :  { %612 = vmatpush.bf16.msra.mxu3 %v749_v14 }
  0xb7   :  { %509 = vmatpush.bf16.msrb.mxu0 %v736_v46  ;;  %755 = vmatpush.bf16.msra.mxu1 %v736_v46 }
  0xb8   :  { %531 = vmatpush.bf16.msra.mxu2 %v741_v54 }
  0xba   :  { %613 = vmatpush.bf16.msra.mxu3 %v748_v16 }
  0xbb   :  { %510 = vmatpush.bf16.msrb.mxu0 %v735_v47  ;;  %756 = vmatpush.bf16.msra.mxu1 %v735_v47 }
  0xbc   :  { %532 = vmatpush.bf16.msra.mxu2 %v740_v29 }
  0xbd   :  { %318 = vrot.lane.b32.xlu0 %v315_v44, %s766_s0  ;;  %v765_v44 = vld [vmem:[%s1103_s6] ss:$0 sm:$0xff] }
  0xbe   :  { %614 = vmatpush.bf16.msra.mxu3 %v747_v17 }
  0xbf   :  { %511 = vmatpush.bf16.msrb.mxu0 %v734_v48  ;;  %757 = vmatpush.bf16.msra.mxu1 %v734_v48 }
  0xc2   :  { %615 = vmatpush.bf16.msra.mxu3 %v746_v19 }
  0xc3   :  { %512 = vmatpush.bf16.msrb.mxu0 %v733_v50  ;;  %758 = vmatpush.bf16.msra.mxu1 %v733_v50 }
  0xc7   :  { %513 = vmatpush.bf16.msrb.mxu0 %v732_v52  ;;  %759 = vmatpush.bf16.msra.mxu1 %v732_v52 }
  0xf3   :  { %v317_v57 = vpop.permute.xlu2 %316 }
 0x107   :  { %v343_v60 = vpop.permute.xlu2 %342 }
 0x108   :  { %v381_v4 = vsel %vm53_vm0, %v329_v33, %v343_v60 }
 0x10e   :  { %v289_v55 = vpop.permute.xlu1 %288 }
 0x10f   :  { %v360_v36 = vsel %vm53_vm0, %v276_v8, %v289_v55  ;;  %v305_v3 = vpop.permute.xlu2 %304 }
 0x116   :  { %v303_v56 = vpop.permute.xlu1 %302 }
 0x117   :  { %v366_v59 = vsel %vm364_vm13, %v360_v36, %v303_v56  ;;  %v341_v61 = vpop.permute.xlu0 %340 }
 0x118   :  { %v371_v62 = vsel %vm369_vm14, %v366_v59, %v317_v57  ;;  %v378_v63 = vsel %vm53_vm0, %v328_v23, %v341_v61 }
 0x119   :  { %514 = vmatmul.bf16.vlgmr.msrb.gmra.mxu0 %v371_v62 }
 0x11e   :  { %v291_v8 = vpop.permute.xlu1 %290 }
 0x11f   :  { %v355_v0 = vpop.permute.xlu0 %354  ;;  %v363_v2 = vsel %vm53_vm0, %v277_v41, %v291_v8 }
 0x120   :  { %v383_v22 = vsel %vm364_vm13, %v378_v63, %v355_v0  ;;  %v368_v5 = vsel %vm364_vm13, %v363_v2, %v305_v3 }
 0x121   :  { %702 = vmatmul.msk.bf16.vlgmr.msra.gmra.mxu2 %vm369_vm14, %v383_v22 }
 0x127   :  { %v357_v1 = vpop.permute.xlu0 %356 }
 0x128   :  { %v385_v11 = vsel %vm364_vm13, %v381_v4, %v357_v1 }
 0x12f   :  { %v319_v6 = vpop.permute.xlu0 %318 }
 0x130   :  { %v374_v10 = vsel %vm369_vm14, %v368_v5, %v319_v6 }
 0x131   :  { %519 = vmatmul.bf16.vlgmr.msra.gmra.mxu1 %v374_v10  ;;  %703 = vmatmul.msk.bf16.gmra.mxu2 %vm369_vm14, %v385_v11 }
 0x196   :  { %v515_v7 = vpop.f32.mrf.mxu0 }
 0x197   :  { %v516_v21 = vadd.f32 %v764_v20, %v515_v7 }
 0x19e   :  { %v517_v32 = vpop.f32.mrf.mxu0 }
 0x19f   :  { %v518_v23 = vadd.f32 %v764_v20, %v517_v32 }
 0x1a4   :  { %v534_v18 = vpop.f32.mrf.mxu2 }
 0x1a5   :  { %v535_v24 = vadd.f32 %v534_v18, %v516_v21 }
 0x1a7   :  { %v544_v15 = vmax.f32 %v535_v24, 0.0 }
 0x1ac   :  { %v536_v25 = vpop.f32.mrf.mxu2 }
 0x1ad   :  { %v537_v27 = vadd.f32 %v536_v25, %v518_v23 }
 0x1ae   :  { %v520_v28 = vpop.f32.mrf.mxu1 }
 0x1af   :  { %v545_v33 = vmax.f32 %v537_v27, 0.0  ;;  %v521_v37 = vadd.f32 %v764_v20, %v520_v28 }
 0x1b1   :  { %v548_v13 = vpack.c.bf16 %v545_v33, %v544_v15 }
 0x1b3   :  { %728 = vmatmul.msk.bf16.vlgmr.msra.gmra.mxu3 %vm369_vm14, %v548_v13 }
 0x1b4   :  { %v539_v34 = vpop.f32.mrf.mxu2 }
 0x1b5   :  { %v540_v38 = vadd.f32 %v539_v34, %v521_v37 }
 0x1b6   :  { %v522_v35 = vpop.f32.mrf.mxu1 }
 0x1b7   :  { %v523_v9 = vadd.f32 %v764_v20, %v522_v35  ;;  %v546_v30 = vmax.f32 %v540_v38, 0.0 }
 0x1bc   :  { %v541_v40 = vpop.f32.mrf.mxu2 }
 0x1bd   :  { %v542_v41 = vadd.f32 %v541_v40, %v523_v9 }
 0x1bf   :  { %v547_v42 = vmax.f32 %v542_v41, 0.0 }
 0x1c1   :  { %v549_v43 = vpack.c.bf16 %v547_v42, %v546_v30 }
 0x1c3   :  { %729 = vmatmul.msk.bf16.gmra.mxu3 %vm369_vm14, %v549_v43 }
 0x236   :  { %v617_v45 = vpop.f32.mrf.mxu3 }
 0x237   :  { %v618_v31 = vadd.f32 %v765_v44, %v617_v45 }
 0x239   :  { %628 = vst.msk [vmem:[%s1105_s7] sm:$0xff] %vm627_vm15, %v618_v31 }
 0x23e   :  { %v619_v58 = vpop.f32.mrf.mxu3 }
 0x23f   :  { %v620_v46 = vadd.f32 %v765_v44, %v619_v58 }
 0x241   :  { %629 = vst.msk [vmem:[%s1105_s7 + $0x8] sm:$0xff] %vm627_vm15, %v620_v46 }
 0x246   :  { %v622_v47 = vpop.f32.mrf.mxu3 }
 0x247   :  { %v623_v39 = vadd.f32 %v765_v44, %v622_v47 }
 0x249   :  { %630 = vst.msk [vmem:[%s1105_s7 + $0x10] sm:$0xff] %vm627_vm15, %v623_v39 }
 0x24e   :  { %v624_v48 = vpop.f32.mrf.mxu3 }
 0x24f   :  { %v625_v49 = vadd.f32 %v765_v44, %v624_v48 }
 0x251   :  { %631 = vst.msk [vmem:[%s1105_s7 + $0x18] sm:$0xff] %vm627_vm15, %v625_v49 }

</bundles_post_ra>
